<compile_context>
chip_gen: v7x
topology: tpu7x:2x2x1
jax: 0.10.0
libtpu: 0.0.40
codegen_flags: <defaults>
</compile_context>

<pallas_src>
import jax
import jax.numpy as jnp
import numpy as np
from jax import lax
from jax.experimental import pallas as pl
from jax.experimental.pallas import tpu as pltpu


def get_dct_filter(width: int) -> jnp.ndarray:
    """DCT-II basis identical to the PyTorch get_dct_filter (float32)."""
    v = jnp.arange(width, dtype=jnp.float32)[:, None]
    j = jnp.arange(width, dtype=jnp.float32)[None, :]
    base = jnp.cos(jnp.pi * (0.5 + j) * v / width) / jnp.sqrt(jnp.float32(width))
    scale = jnp.where(v != 0, jnp.sqrt(jnp.float32(2.0)), jnp.float32(1.0))
    return (base * scale).astype(jnp.float32)


def _round_up(a: int, b: int) -> int:
    return ((a + b - 1) // b) * b


def _dct_kernel(x_ref, wt_ref, o_ref):
    # x_ref: (tm, Wp) lane-packed input tile.
    # wt_ref: (Wp, Wp) block-diagonal weight.T, resident in VMEM (constant
    #         index_map -> fetched once, never re-DMA'd).
    o_ref[...] = jnp.dot(
        x_ref[...],
        wt_ref[...],
        preferred_element_type=jnp.float32,
        precision=lax.Precision.HIGHEST,
    ).astype(o_ref.dtype)


def _pack_weight(weight: jnp.ndarray):
    """Block-diagonal weight.T so a lane-packed row chunk computes exactly
    x_chunk @ weight.T for every W-wide chunk independently."""
    w_dim = weight.shape[0]
    # NOTE: for W that does not divide 128 this falls back to Wp = pack*W
    # (full-dim block, masked partial-lane stores). W = 16 -> Wp = 128 is the
    # lane-dense fast path used by this module.
    pack = max(1, 128 // w_dim) if w_dim <= 128 else 1
    wt = weight.T.astype(jnp.float32)
    if pack > 1:
        wt = jnp.kron(jnp.eye(pack, dtype=wt.dtype), wt)
    return wt, pack


def _dct2d_x_apply(x, wt_packed, pack, *, target_tile_rows, stream_bf16):
    B, C, H, W = x.shape
    M = B * C * H
    Wp = pack * W

    compute_dtype = jnp.bfloat16 if stream_bf16 else jnp.float32
    itemsize = 2 if stream_bf16 else 4
    sublane = 16 if stream_bf16 else 8  # second-to-last block dim multiple per dtype

    x2 = x.astype(compute_dtype).reshape(M, W)

    # Lane packing is a *free* reshape when M % pack == 0 (any H that is a
    # multiple of pack). Only for unusual shapes do we pad <= pack-1 rows,
    # which costs one extra copy of the (usually tiny) tail-bearing array.
    M_pack = _round_up(M, pack)
    if M_pack != M:
        x2 = jnp.pad(x2, ((0, M_pack - M), (0, 0)))
    xp = x2.reshape(M_pack // pack, Wp)
    Mp = xp.shape[0]

    wt = wt_packed.astype(compute_dtype) if stream_bf16 else wt_packed

    # Tile rows: big enough to amortize the ~0.35 us/step grid overhead, small
    # enough that the grid has ~8+ steps (DMA/compute overlap; v7x megacore),
    # capped so double-buffered in+out tiles stay ~16 MiB of scoped VMEM.
    tm = min(target_tile_rows, _round_up(pl.cdiv(Mp, 8), sublane))
    if tm >= Mp:
        tm = Mp  # single full-extent block (block dim == array dim is legal)
    grid = (pl.cdiv(Mp, tm),)

    cost = pl.CostEstimate(
        flops=2 * Mp * Wp * Wp,
        transcendentals=0,
        bytes_accessed=2 * Mp * Wp * itemsize + Wp * Wp * itemsize,
    )

    out = pl.pallas_call(
        _dct_kernel,
        out_shape=jax.ShapeDtypeStruct((Mp, Wp), compute_dtype),
        grid_spec=pltpu.PrefetchScalarGridSpec(
            num_scalar_prefetch=0,
            grid=grid,
            in_specs=[
                pl.BlockSpec((tm, Wp), lambda i: (i, 0)),
                pl.BlockSpec((Wp, Wp), lambda i: (0, 0)),  # VMEM-resident weight
            ],
            out_specs=pl.BlockSpec((tm, Wp), lambda i: (i, 0)),
        ),
        compiler_params=pltpu.CompilerParams(
            dimension_semantics=("parallel",),
            vmem_limit_bytes=32 * 1024 * 1024,
        ),
        cost_estimate=cost,
    )(xp, wt)

    # Unpack; slicing only happens in the rare pad-to-pack fallback.
    out = out.reshape(M_pack, W)
    if M_pack != M:
        out = out[:M]
    return out.reshape(B, C, H, W)


def make_dct2d_spatial_transform_x(
    width: int, *, target_tile_rows: int = 8192, stream_bf16: bool = False
):
    """Factory mirroring the nn.Module: builds the DCT filter and its packed
    block-diagonal form ONCE (hoisted out of the per-call path) and returns a
    jitted apply(x) for NCHW inputs with x.shape[-1] == width."""
    weight = get_dct_filter(width)
    wt_packed, pack = _pack_weight(weight)

    @jax.jit
    def apply(x):
        return _dct2d_x_apply(
            x,
            wt_packed,
            pack,
            target_tile_rows=target_tile_rows,
            stream_bf16=stream_bf16,
        )

    return apply


if __name__ == "__main__":
    W = 16
    apply_dct = make_dct2d_spatial_transform_x(W)
    weight_np = np.asarray(get_dct_filter(W))

    def ref_np(x):
        return np.einsum("bchj,vj->bchv", np.asarray(x, dtype=np.float32), weight_np)

    # 1) Module's natural small shape: lane-packed fast path, zero host copies.
    x1 = jax.random.normal(jax.random.PRNGKey(0), (2, 4, 16, 16), dtype=jnp.float32)
    out1 = jax.block_until_ready(apply_dct(x1))
    assert out1.shape == x1.shape
    assert np.allclose(np.asarray(out1), ref_np(x1), atol=1e-4, rtol=1e-4)

    # 2) Ragged grid tail: Mp = 9 packed rows with tm = 8 -> masked boundary
    #    block handled by the cdiv grid, no host-side padding pass.
    x2 = jax.random.normal(jax.random.PRNGKey(1), (1, 1, 72, 16), dtype=jnp.float32)
    out2 = jax.block_until_ready(apply_dct(x2))
    assert np.allclose(np.asarray(out2), ref_np(x2), atol=1e-4, rtol=1e-4)

    # 3) Row count not divisible by the packing factor: exercises the small
    #    pad-to-pack fallback path.
    x3 = jax.random.normal(jax.random.PRNGKey(2), (1, 3, 7, 16), dtype=jnp.float32)
    out3 = jax.block_until_ready(apply_dct(x3))
    assert np.allclose(np.asarray(out3), ref_np(x3), atol=1e-4, rtol=1e-4)

    print("KERNEL_OK")
</pallas_src>

<mosaic_0001>
module attributes {stable_mosaic.version = 11 : i64} {
  func.func @_dct_kernel(%arg0: i32, %arg1: memref<8x128xf32, #tpu.memory_space<vmem>>, %arg2: memref<128x128xf32, #tpu.memory_space<vmem>>, %arg3: memref<8x128xf32, #tpu.memory_space<vmem>>) attributes {dimension_semantics = [#tpu.dimension_semantics<parallel>], iteration_bounds = array<i64: 2>, scalar_prefetch = 0 : i64, scratch_operands = 0 : i64, tpu.core_type = #tpu.core_type<tc>, window_params = [{transform_indices = @transform_0, window_bounds = array<i64: 8, 128>}, {pipeline_mode = #tpu.pipeline_mode<synchronous>, transform_indices = @transform_1, window_bounds = array<i64: 128, 128>}, {transform_indices = @transform_2, window_bounds = array<i64: 8, 128>}]} {
    %c0 = arith.constant 0 : index
    %c0_0 = arith.constant 0 : index
    %0 = vector.load %arg1[%c0, %c0_0] : memref<8x128xf32, #tpu.memory_space<vmem>>, vector<8x128xf32>
    %c0_1 = arith.constant 0 : index
    %c0_2 = arith.constant 0 : index
    %1 = vector.load %arg2[%c0_1, %c0_2] : memref<128x128xf32, #tpu.memory_space<vmem>>, vector<128x128xf32>
    %cst = arith.constant dense<0.000000e+00> : vector<8x128xf32>
    %2 = tpu.matmul %0, %1, %cst {dimension_numbers = #tpu.dot_dimension_numbers<[1], [0], [0], [1], [0, 0, 1, 1], [], []>, precision = #tpu.contract_precision<fp32>} : vector<8x128xf32>, vector<128x128xf32>, vector<8x128xf32> -> vector<8x128xf32>
    %c0_3 = arith.constant 0 : index
    %c0_4 = arith.constant 0 : index
    %3 = vector.load %arg3[%c0_3, %c0_4] : memref<8x128xf32, #tpu.memory_space<vmem>>, vector<8x128xf32>
    tpu.vector_store %arg3[%c0_3, %c0_4], %2 {strides = array<i32>} : memref<8x128xf32, #tpu.memory_space<vmem>>, vector<8x128xf32>,
    return
  }
  func.func @transform_0(%arg0: i32) -> (i32, i32) {
    %c0_i32 = arith.constant 0 : i32
    %c0_i32_0 = arith.constant 0 : i32
    return %arg0, %c0_i32 : i32, i32
  }
  func.func @transform_1(%arg0: i32) -> (i32, i32) {
    %c0_i32 = arith.constant 0 : i32
    %c0_i32_0 = arith.constant 0 : i32
    %c0_i32_1 = arith.constant 0 : i32
    return %c0_i32, %c0_i32_0 : i32, i32
  }
  func.func @transform_2(%arg0: i32) -> (i32, i32) {
    %c0_i32 = arith.constant 0 : i32
    %c0_i32_0 = arith.constant 0 : i32
    return %arg0, %c0_i32 : i32, i32
  }
}

</mosaic_0001>

<bundles_post_ra>
// kernel: apply.1
= control target key start
LH: loop header
LB: loop body
LE: loop exit
PB: predicated region body
PF: predicated region fallthrough
CT: control target
= control target key end

     0   :  { %s1362_s9 = smov 0   ;;  %s1697_s0 = inlined_call_operand.vmem [shape: f32[16,128], index: 0, kind: input, shape index: {}]   ;;  %s1698_s1 = inlined_call_operand.vmem [shape: f32[128,128], index: 1, kind: input, shape index: {}]   ;;  %s1699_s2 = inlined_call_operand.vmem [shape: f32[16,128], index: 2, kind: output, shape index: {}]  }
   0x1 LB: > { %s851_s10 = sadd.s32 4294967295, %s1342_s9   ;;  %p855_p0 = scmp.ge.s32.totalorder %s1342_s9, 1  ;;  %s1342_s9 = sphi %s1362_s9, %s12_s9  }
   0x2   : > { %p111_p1 = scmp.lt.s32.totalorder %s1342_s9, 3 }
   0x4   : > { %p112_p2 = pnand %p855_p0, %p111_p1 }
   0x5   : > { %v140_v0 = vld [vmem:[%s1698_s1] sm:$0xff] (!%p112_p2)  ;;  %v141_v1 = vld [vmem:[%s1698_s1 + $0x8] sm:$0xff] (!%p112_p2)  ;;  %v142_v2 = vld [vmem:[%s1698_s1 + $0x10] sm:$0xff] (!%p112_p2)  ;;  %v1344_v3 = vmov (!%p112_p2), 0.0|0.0   ;;  %vm1345_vm0 = vmmov (!%p112_p2), 0   ;;  %v1346_v11 = vmov (!%p112_p2), 0.0  }
   0x6   : > { %115 = sbr.rel (%p112_p2) target bundleno = 320 (0x140), region = 28  ;;  %1172 = vmatprep.subr.bf16.mxu1 (!%p112_p2), %v1344_v3  ;;  %1244 = vmatprep.subr.bf16.mxu0 (!%p112_p2), %v1344_v3  ;;  %v157_v4 = vand.u32 (!%p112_p2), 4294901760, %v140_v0  ;;  %v160_v5 = vand.u32 (!%p112_p2), 4294901760, %v141_v1  ;;  %v143_v6 = vld [vmem:[%s1698_s1 + $0x18] sm:$0xff] (!%p112_p2)  ;;  %v163_v7 = vand.u32 (!%p112_p2), 4294901760, %v142_v2  ;;  %v1387_v9 = vld [vmem:[%s1698_s1 + $0x20] sm:$0xff] (!%p112_p2) }
   0x7   : > { %v166_v8 = vand.u32 (!%p112_p2), 4294901760, %v143_v6  ;;  %v1392_v10 = vld [vmem:[%s1698_s1 + $0x28] sm:$0xff] (!%p112_p2)  ;;  %994 = vmatprep.mubr.msk.f32.mxu1 (!%p112_p2), %vm1345_vm0, %v1346_v11  ;;  %1099 = vmatprep.mubr.msk.f32.mxu0 (!%p112_p2), %vm1345_vm0, %v1346_v11  ;;  %p131_p3 = scmp.lt.s32.totalorder (!%p112_p2), %s851_s10, 1  ;;  %v169_v14 = vand.u32 (!%p112_p2), 4294901760, %v1387_v9  ;;  %v1413_v16 = vld [vmem:[%s1698_s1 + $0x30] sm:$0xff] (!%p112_p2)  ;;  %v1418_v17 = vld [vmem:[%s1698_s1 + $0x38] sm:$0xff] (!%p112_p2) }
   0x8   : > { %v1398_v12 = vpack.c.bf16 (!%p112_p2), %v160_v5, %v157_v4  ;;  %v172_v15 = vand.u32 (!%p112_p2), 4294901760, %v1392_v10  ;;  %v175_v19 = vand.u32 (!%p112_p2), 4294901760, %v1413_v16  ;;  %v178_v20 = vand.u32 (!%p112_p2), 4294901760, %v1418_v17  ;;  %v1432_v21 = vld [vmem:[%s1698_s1 + $0x40] sm:$0xff] (!%p112_p2)  ;;  %v1437_v22 = vld [vmem:[%s1698_s1 + $0x48] sm:$0xff] (!%p112_p2)  ;;  %v1455_v27 = vld [vmem:[%s1698_s1 + $0x50] sm:$0xff] (!%p112_p2) }
   0x9   : > { %v1402_v13 = vpack.c.bf16 (!%p112_p2), %v166_v8, %v163_v7  ;;  %v181_v24 = vand.u32 (!%p112_p2), 4294901760, %v1432_v21  ;;  %v184_v25 = vand.u32 (!%p112_p2), 4294901760, %v1437_v22  ;;  %v1460_v28 = vld [vmem:[%s1698_s1 + $0x58] sm:$0xff] (!%p112_p2)  ;;  %v1462_v29 = vsub.f32 (!%p112_p2), %v140_v0, %v157_v4  ;;  %v1477_v35 = vld [vmem:[%s1698_s1 + $0x60] sm:$0xff] (!%p112_p2)  ;;  %v1484_v36 = vld [vmem:[%s1698_s1 + $0x68] sm:$0xff] (!%p112_p2) }
   0xa   : > { %1174 = vmatpush3.bf16.msra.mxu1 (!%p112_p2), %v1398_v12  ;;  %1246 = vmatpush3.bf16.msra.mxu0 (!%p112_p2), %v1398_v12  ;;  %v1423_v18 = vpack.c.bf16 (!%p112_p2), %v172_v15, %v169_v14  ;;  %v1446_v23 = vpack.c.bf16 (!%p112_p2), %v178_v20, %v175_v19  ;;  %v1466_v31 = vsub.f32 (!%p112_p2), %v141_v1, %v160_v5  ;;  %v187_v33 = vand.u32 (!%p112_p2), 4294901760, %v1455_v27  ;;  %v1506_v43 = vld [vmem:[%s1698_s1 + $0x70] sm:$0xff] (!%p112_p2)  ;;  %v1511_v44 = vld [vmem:[%s1698_s1 + $0x78] sm:$0xff] (!%p112_p2) }
   0xb   : > { %1175 = vmatprep.subr.bf16.mxu1 (!%p112_p2), %v1344_v3  ;;  %1247 = vmatprep.subr.bf16.mxu0 (!%p112_p2), %v1344_v3  ;;  %v1470_v32 = vpack.c.bf16 (!%p112_p2), %v184_v25, %v181_v24  ;;  %v190_v34 = vand.u32 (!%p112_p2), 4294901760, %v1460_v28  ;;  %v1486_v37 = vsub.f32 (!%p112_p2), %v142_v2, %v163_v7  ;;  %v1488_v38 = vsub.f32 (!%p112_p2), %v143_v6, %v166_v8 }
   0xc   : > { %v193_v39 = vand.u32 (!%p112_p2), 4294901760, %v1477_v35  ;;  %v196_v42 = vand.u32 (!%p112_p2), 4294901760, %v1484_v36  ;;  %v250_v45 = vand.u32 (!%p112_p2), 4294901760, %v1462_v29  ;;  %v257_v46 = vand.u32 (!%p112_p2), 4294901760, %v1466_v31 }
   0xd   : > { %s1701_s10 = smov (!%p131_p3, %s851_s10), 1  ;;  %v1500_v41 = vpack.c.bf16 %v190_v34, %v187_v33  ;;  %v1518_v47 = vsub.f32 %v1387_v9, %v169_v14  ;;  %v1521_v48 = vsub.f32 %v1392_v10, %v172_v15  ;;  %v199_v49 = vand.u32 4294901760, %v1506_v43 }
   0xe   : > { %s856_s27 = sshll.u32 %s1701_s10, 3  ;;  %1177 = vmatpush3.bf16.msra.mxu1 %v1402_v13  ;;  %1249 = vmatpush3.bf16.msra.mxu0 %v1402_v13  ;;  %v202_v50 = vand.u32 4294901760, %v1511_v44  ;;  %v264_v52 = vand.u32 4294901760, %v1486_v37  ;;  %v1533_v53 = vpack.c.bf16 %v196_v42, %v193_v39  ;;  %v251_v54 = vsub.f32 %v1462_v29, %v250_v45 }
   0xf   : > { %1178 = vmatprep.subr.bf16.mxu1 %v1344_v3  ;;  %1250 = vmatprep.subr.bf16.mxu0 %v1344_v3  ;;  %s134_s6 = scalar_lea.vmem %s1697_s0, %s856_s27  ;;  %v258_v55 = vsub.f32 %v1466_v31, %v257_v46  ;;  %v271_v56 = vand.u32 4294901760, %v1488_v38  ;;  %v1541_v57 = vsub.f32 %v1413_v16, %v175_v19  ;;  %v1544_v58 = vsub.f32 %v1418_v17, %v178_v20  ;;  %s138_s23 = scalar_lea.vmem %s1699_s2, %s856_s27 }
  0x10   : > { %v139_v26 = vld [vmem:[%s134_s6] sm:$0xff]  ;;  %v265_v60 = vsub.f32 %v1486_v37, %v264_v52  ;;  %v278_v61 = vand.u32 4294901760, %v1518_v47  ;;  %v285_v62 = vand.u32 4294901760, %v1521_v48  ;;  %v1556_v63 = vpack.c.bf16 %v202_v50, %v199_v49 }
  0x11   : > { %v1464_v30 = vand.u32 4294901760, %v139_v26  ;;  %v252_v0 = vand.u32 4294901760, %v251_v54  ;;  %v259_v1 = vand.u32 4294901760, %v258_v55  ;;  %v272_v2 = vsub.f32 %v1488_v38, %v271_v56 }
  0x12   : > { %1180 = vmatpush3.bf16.msra.mxu1 %v1423_v18  ;;  %1252 = vmatpush3.bf16.msra.mxu0 %v1423_v18  ;;  %v1562_v4 = vsub.f32 %v1432_v21, %v181_v24  ;;  %v1565_v5 = vsub.f32 %v1437_v22, %v184_v25  ;;  %v1269_v6 = vpack.c.bf16 %v257_v46, %v250_v45  ;;  %v266_v8 = vand.u32 4294901760, %v265_v60 }
  0x13   : > { %1181 = vmatprep.subr.bf16.mxu1 %v1344_v3  ;;  %1253 = vmatprep.subr.bf16.mxu0 %v1344_v3  ;;  %v1492_v40 = vsub.f32 %v139_v26, %v1464_v30  ;;  %v279_v9 = vsub.f32 %v1518_v47, %v278_v61  ;;  %v286_v10 = vsub.f32 %v1521_v48, %v285_v62  ;;  %v273_v15 = vand.u32 4294901760, %v272_v2 }
  0x14   : > { %v1197_v14 = vpack.c.bf16 %v259_v1, %v252_v0  ;;  %v292_v16 = vand.u32 4294901760, %v1541_v57  ;;  %v299_v17 = vand.u32 4294901760, %v1544_v58  ;;  %v1578_v19 = vsub.f32 %v1455_v27, %v187_v33 }
  0x15   : > { %v239_v51 = vand.u32 4294901760, %v1492_v40  ;;  %v1583_v20 = vsub.f32 %v1460_v28, %v190_v34  ;;  %v1272_v21 = vpack.c.bf16 %v271_v56, %v264_v52  ;;  %v280_v22 = vand.u32 4294901760, %v279_v9 }
  0x16   : > { %1183 = vmatpush3.bf16.msra.mxu1 %v1446_v23  ;;  %1255 = vmatpush3.bf16.msra.mxu0 %v1446_v23  ;;  %v287_v24 = vand.u32 4294901760, %v286_v10  ;;  %v306_v25 = vand.u32 4294901760, %v1562_v4  ;;  %v1200_v26 = vpack.c.bf16 %v273_v15, %v266_v8  ;;  %v293_v45 = vsub.f32 %v1541_v57, %v292_v16 }
  0x17   : > { %1184 = vmatprep.subr.bf16.mxu1 %v1344_v3  ;;  %1256 = vmatprep.subr.bf16.mxu0 %v1344_v3  ;;  %v240_v59 = vsub.f32 %v1492_v40, %v239_v51  ;;  %v300_v27 = vsub.f32 %v1544_v58, %v299_v17  ;;  %v313_v33 = vand.u32 4294901760, %v1565_v5  ;;  %v1594_v28 = vsub.f32 %v1477_v35, %v193_v39 }
  0x18   : > { %v1599_v34 = vsub.f32 %v1484_v36, %v196_v42  ;;  %v1203_v46 = vpack.c.bf16 %v287_v24, %v280_v22  ;;  %v307_v52 = vsub.f32 %v1562_v4, %v306_v25  ;;  %v320_v54 = vand.u32 4294901760, %v1578_v19 }
  0x19   : > { %v241_v7 = vand.u32 4294901760, %v240_v59  ;;  %v294_v35 = vand.u32 4294901760, %v293_v45  ;;  %v301_v39 = vand.u32 4294901760, %v300_v27  ;;  %v314_v55 = vsub.f32 %v1565_v5, %v313_v33 }
  0x1a   : > { %1186 = vmatpush3.bf16.msra.mxu1 %v1470_v32  ;;  %1258 = vmatpush3.bf16.msra.mxu0 %v1470_v32  ;;  %v327_v36 = vand.u32 4294901760, %v1583_v20  ;;  %v1614_v42 = vsub.f32 %v1506_v43, %v199_v49  ;;  %v1619_v56 = vsub.f32 %v1511_v44, %v202_v50  ;;  %v1278_v59 = vpack.c.bf16 %v299_v17, %v292_v16 }
  0x1b   : > { %1187 = vmatprep.subr.bf16.mxu1 %v1344_v3  ;;  %1259 = vmatprep.subr.bf16.mxu0 %v1344_v3  ;;  %v308_v60 = vand.u32 4294901760, %v307_v52  ;;  %v1206_v0 = vpack.c.bf16 %v301_v39, %v294_v35  ;;  %v315_v1 = vand.u32 4294901760, %v314_v55  ;;  %v341_v43 = vand.u32 4294901760, %v1599_v34 }
  0x1c   : > { %v328_v2 = vsub.f32 %v1583_v20, %v327_v36  ;;  %v1281_v44 = vpack.c.bf16 %v313_v33, %v306_v25  ;;  %v355_v10 = vand.u32 4294901760, %v1619_v56 }
  0x1d   : > { %v342_v9 = vsub.f32 %v1599_v34, %v341_v43 }
  0x1e   : > { %1189 = vmatpush3.bf16.msra.mxu1 %v1500_v41  ;;  %1261 = vmatpush3.bf16.msra.mxu0 %v1500_v41  ;;  %v329_v8 = vand.u32 4294901760, %v328_v2  ;;  %v356_v22 = vsub.f32 %v1619_v56, %v355_v10 }
  0x1f   : > { %1190 = vmatprep.subr.bf16.mxu1 %v1344_v3  ;;  %1262 = vmatprep.subr.bf16.mxu0 %v1344_v3  ;;  %v343_v17 = vand.u32 4294901760, %v342_v9 }
  0x20   : > { %v357_v45 = vand.u32 4294901760, %v356_v22 }
  0x22   : > { %1192 = vmatpush3.bf16.msra.mxu1 %v1533_v53  ;;  %1264 = vmatpush3.bf16.msra.mxu0 %v1533_v53 }
  0x23   : > { %1193 = vmatprep.subr.bf16.mxu1 %v1344_v3  ;;  %1265 = vmatprep.subr.bf16.mxu0 %v1344_v3 }
  0x26   : > { %1195 = vmatpush3.bf16.msra.mxu1 %v1556_v63  ;;  %1267 = vmatpush3.bf16.msra.mxu0 %v1556_v63 }
  0x27   : > { %1196 = vmatprep.subr.bf16.mxu1 %v1344_v3  ;;  %1268 = vmatprep.subr.bf16.mxu0 %v1344_v3 }
  0x29   : > { %995 = vmatmul.mubr.f32.vlgmr.msra.gmra.mrb[0].mxu1 %v241_v7  ;;  %1100 = vmatmul.mubr.f32.vlgmr.msra.gmra.mrb[0].mxu0 %v239_v51  ;;  %v1275_v51 = vpack.c.bf16 %v285_v62, %v278_v61  ;;  %v321_v61 = vsub.f32 %v1578_v19, %v320_v54  ;;  %v334_v62 = vand.u32 4294901760, %v1594_v28  ;;  %v1209_v7 = vpack.c.bf16 %v315_v1, %v308_v60 }
  0x2a   : > { %1198 = vmatpush3.bf16.msra.mxu1 %v1197_v14  ;;  %1270 = vmatpush3.bf16.msra.mxu0 %v1269_v6  ;;  %v348_v6 = vand.u32 4294901760, %v1614_v42  ;;  %v1284_v14 = vpack.c.bf16 %v327_v36, %v320_v54 }
  0x2b   : > { %1199 = vmatprep.subr.bf16.mxu1 %v1344_v3  ;;  %1271 = vmatprep.subr.bf16.mxu0 %v1344_v3  ;;  %v322_v49 = vand.u32 4294901760, %v321_v61  ;;  %v335_v50 = vsub.f32 %v1594_v28, %v334_v62  ;;  %v1287_v25 = vpack.c.bf16 %v341_v43, %v334_v62 }
  0x2c   : > { %1029 = vmatprep.mubr.msk.f32.mxu1 %vm1345_vm0, %v1346_v11  ;;  %1134 = vmatprep.mubr.msk.f32.mxu0 %vm1345_vm0, %v1346_v11  ;;  %v1290_v33 = vpack.c.bf16 %v355_v10, %v348_v6 }
  0x2d   : > { %v336_v15 = vand.u32 4294901760, %v335_v50  ;;  %v1212_v16 = vpack.c.bf16 %v329_v8, %v322_v49 }
  0x2e   : > { %1201 = vmatpush3.bf16.msra.mxu1 %v1200_v26  ;;  %1273 = vmatpush3.bf16.msra.mxu0 %v1272_v21  ;;  %v349_v21 = vsub.f32 %v1614_v42, %v348_v6 }
  0x2f   : > { %1202 = vmatprep.subr.bf16.mxu1 %v1344_v3  ;;  %1274 = vmatprep.subr.bf16.mxu0 %v1344_v3  ;;  %v1215_v24 = vpack.c.bf16 %v343_v17, %v336_v15 }
  0x30   : > { %v350_v26 = vand.u32 4294901760, %v349_v21 }
  0x32   : > { %1204 = vmatpush3.bf16.msra.mxu1 %v1203_v46  ;;  %1276 = vmatpush3.bf16.msra.mxu0 %v1275_v51  ;;  %v1218_v27 = vpack.c.bf16 %v357_v45, %v350_v26  ;;  %v1221_v46 = vpack.c.bf16 %v1466_v31, %v1462_v29  ;;  %v1224_v51 = vpack.c.bf16 %v1488_v38, %v1486_v37 }
  0x33   : > { %1205 = vmatprep.subr.bf16.mxu1 %v1344_v3  ;;  %1277 = vmatprep.subr.bf16.mxu0 %v1344_v3  ;;  %v1227_v29 = vpack.c.bf16 %v1521_v48, %v1518_v47 }
  0x36   : > { %1207 = vmatpush3.bf16.msra.mxu1 %v1206_v0  ;;  %1279 = vmatpush3.bf16.msra.mxu0 %v1278_v59 }
  0x37   : > { %1208 = vmatprep.subr.bf16.mxu1 %v1344_v3  ;;  %1280 = vmatprep.subr.bf16.mxu0 %v1344_v3 }
  0x3a   : > { %1210 = vmatpush3.bf16.msra.mxu1 %v1209_v7  ;;  %1282 = vmatpush3.bf16.msra.mxu0 %v1281_v44 }
  0x3b   : > { %1211 = vmatprep.subr.bf16.mxu1 %v1344_v3  ;;  %1283 = vmatprep.subr.bf16.mxu0 %v1344_v3 }
  0x3e   : > { %1213 = vmatpush3.bf16.msra.mxu1 %v1212_v16  ;;  %1285 = vmatpush3.bf16.msra.mxu0 %v1284_v14 }
  0x3f   : > { %1214 = vmatprep.subr.bf16.mxu1 %v1344_v3  ;;  %1286 = vmatprep.subr.bf16.mxu0 %v1344_v3 }
  0x42   : > { %1216 = vmatpush3.bf16.msra.mxu1 %v1215_v24  ;;  %1288 = vmatpush3.bf16.msra.mxu0 %v1287_v25 }
  0x43   : > { %1217 = vmatprep.subr.bf16.mxu1 %v1344_v3  ;;  %1289 = vmatprep.subr.bf16.mxu0 %v1344_v3 }
  0x46   : > { %1219 = vmatpush3.bf16.msra.mxu1 %v1218_v27  ;;  %1291 = vmatpush3.bf16.msra.mxu0 %v1290_v33 }
  0x47   : > { %1220 = vmatprep.subr.bf16.mxu1 %v1344_v3  ;;  %1292 = vmatprep.subr.bf16.mxu0 %v1344_v3 }
  0x49   : > { %1030 = vmatmul.mubr.f32.vlgmr.msra.gmra.mrb[0].mxu1 %v1464_v30  ;;  %1135 = vmatmul.mubr.f32.vlgmr.msra.gmra.mrb[0].mxu0 %v1464_v30 }
  0x4a   : > { %1222 = vmatpush3.bf16.msra.mxu1 %v1221_v46  ;;  %1294 = vmatpush3.bf16.msra.mxu0 %v1398_v12  ;;  %v1230_v12 = vpack.c.bf16 %v1544_v58, %v1541_v57 }
  0x4b   : > { %1223 = vmatprep.subr.bf16.mxu1 %v1344_v3  ;;  %1295 = vmatprep.subr.bf16.mxu0 %v1344_v3 }
  0x4c   : > { %1064 = vmatprep.mubr.msk.f32.mxu1 %vm1345_vm0, %v1346_v11  ;;  %1169 = vmatprep.mubr.msk.f32.mxu0 %vm1345_vm0, %v1346_v11  ;;  %v1233_v11 = vpack.c.bf16 %v1565_v5, %v1562_v4 }
  0x4e   : > { %1225 = vmatpush3.bf16.msra.mxu1 %v1224_v51  ;;  %1297 = vmatpush3.bf16.msra.mxu0 %v1402_v13  ;;  %v1236_v13 = vpack.c.bf16 %v1583_v20, %v1578_v19 }
  0x4f   : > { %1226 = vmatprep.subr.bf16.mxu1 %v1344_v3  ;;  %1298 = vmatprep.subr.bf16.mxu0 %v1344_v3 }
  0x52   : > { %1228 = vmatpush3.bf16.msra.mxu1 %v1227_v29  ;;  %1300 = vmatpush3.bf16.msra.mxu0 %v1423_v18  ;;  %v1239_v18 = vpack.c.bf16 %v1599_v34, %v1594_v28 }
  0x53   : > { %1229 = vmatprep.subr.bf16.mxu1 %v1344_v3  ;;  %1301 = vmatprep.subr.bf16.mxu0 %v1344_v3 }
  0x56   : > { %1231 = vmatpush3.bf16.msra.mxu1 %v1230_v12  ;;  %1303 = vmatpush3.bf16.msra.mxu0 %v1446_v23  ;;  %v1242_v23 = vpack.c.bf16 %v1619_v56, %v1614_v42 }
  0x57   : > { %1232 = vmatprep.subr.bf16.mxu1 %v1344_v3  ;;  %1304 = vmatprep.subr.bf16.mxu0 %v1344_v3 }
  0x5a   : > { %1234 = vmatpush3.bf16.msra.mxu1 %v1233_v11  ;;  %1306 = vmatpush3.bf16.msra.mxu0 %v1470_v32 }
  0x5b   : > { %1235 = vmatprep.subr.bf16.mxu1 %v1344_v3  ;;  %1307 = vmatprep.subr.bf16.mxu0 %v1344_v3 }
  0x5e   : > { %1237 = vmatpush3.bf16.msra.mxu1 %v1236_v13  ;;  %1309 = vmatpush3.bf16.msra.mxu0 %v1500_v41 }
  0x5f   : > { %1238 = vmatprep.subr.bf16.mxu1 %v1344_v3  ;;  %1310 = vmatprep.subr.bf16.mxu0 %v1344_v3 }
  0x62   : > { %1240 = vmatpush3.bf16.msra.mxu1 %v1239_v18  ;;  %1312 = vmatpush3.bf16.msra.mxu0 %v1533_v53 }
  0x63   : > { %1241 = vmatprep.subr.bf16.mxu1 %v1344_v3  ;;  %1313 = vmatprep.subr.bf16.mxu0 %v1344_v3 }
  0x66   : > { %1243 = vmatpush3.bf16.msra.mxu1 %v1242_v23  ;;  %1315 = vmatpush3.bf16.msra.mxu0 %v1556_v63 }
  0x69   : > { %1065 = vmatmul.mubr.f32.vlgmr.msra.gmra.mrb[0].mxu1 %v1492_v40  ;;  %1170 = vmatmul.mubr.f32.vlgmr.msra.gmra.mrb[0].mxu0 %v1464_v30 }
 0x13c   : > { %v498_v31 = vpop.f32.mrb[0].mxu1  ;;  %v793_v32 = vpop.f32.mrb[0].mxu0 }
 0x13d   : > { %v1316_v37 = vadd.f32 %v793_v32, %v498_v31  ;;  %v1066_v38 = vpop.f32.mrb[1].mxu1  ;;  %v1171_v41 = vpop.f32.mrb[1].mxu0 }
 0x13f   : > { %797 = vst [vmem:[%s138_s23] sm:$0xff] %v1316_v37 }
 0x140 PF: > { %s12_s9 = sadd.s32 1, %s1342_s9  }
 0x141   : > { %p9_p4 = scmp.ge.s32.totalorder %s12_s9, 4  }
 0x143   :  { %11 = sbr.rel (!%p9_p4) target bundleno = 1 (0x1), region = 58 }

</bundles_post_ra>
